<compile_context>
chip_gen: v5e
topology: v5e:2x2
jax: 0.10.0
libtpu: 0.0.40
codegen_flags: <defaults>
</compile_context>

<pallas_src>
import functools

import jax
import jax.numpy as jnp
from jax.experimental import pallas as pl
from jax.experimental.pallas import tpu as pltpu


def _mean_pool_kernel(hs_ref, mask_ref, out_ref, acc_ref, *, inv_s):
    # hs_ref:   (TB, TS, TH) VMEM tile of last_hidden_state
    # mask_ref: (TB, TS, 1)  VMEM tile of the mask (lane-splat over hidden dim)
    # out_ref:  (TB, TH)     output tile (resident across the S grid axis)
    # acc_ref:  (TB, TH)     float32 accumulator scratch
    s_idx = pl.program_id(2)

    @pl.when(s_idx == 0)
    def _():
        acc_ref[...] = jnp.zeros_like(acc_ref)

    hs = hs_ref[...].astype(jnp.float32)            # (TB, TS, TH)
    mask = mask_ref[...].astype(jnp.float32)        # (TB, TS, 1) -> lane splat
    acc_ref[...] += jnp.sum(hs * mask, axis=1)      # f32 accumulation over S

    @pl.when(s_idx == pl.num_programs(2) - 1)
    def _():
        # Scale by 1/S once, on the small (TB, TH) accumulator, then cast.
        out_ref[...] = (acc_ref[...] * inv_s).astype(out_ref.dtype)


def _pick_tile(dim, align, max_tile):
    """Largest divisor of `dim` that is a multiple of `align` and <= max_tile.
    Falls back to the full extent when `dim` is not align-divisible (a
    full-extent block always satisfies the (8,128) layout constraint)."""
    if dim % align != 0:
        return dim
    t = (min(max_tile, dim) // align) * align
    while t >= align and dim % t != 0:
        t -= align
    return t if t >= align else dim


def mean_pooling(last_hidden_state, attention_mask, *, tb=None, ts=None, th=None):
    """last_hidden_state: [B, S, H]; attention_mask: [B, 1, S] -> returns [B, H]."""
    B, S, H = last_hidden_state.shape
    dtype = last_hidden_state.dtype
    dtype_bytes = jnp.dtype(dtype).itemsize

    # Glue: squeeze(dim=1) as in the PyTorch forward; keep a trailing size-1
    # axis so the broadcast over H inside the kernel is a lane splat.
    mask3d = jnp.squeeze(attention_mask, axis=1)[:, :, None]   # [B, S, 1]
    mask_bytes = jnp.dtype(mask3d.dtype).itemsize

    # ---- tile selection --------------------------------------------------
    # Output block (TB, TH): TB is a sublane dim -> multiple of 8 or full B.
    if tb is None:
        tb = _pick_tile(B, 8, 8)
    # Keep the output lane axis dense: TH multiple of 128 (or full H).
    if th is None:
        th = _pick_tile(H, 128, 1024)
    # Sequence tile: sublane-aligned, sized so hs block is a few MiB
    # (good pipelining; v7x 64 MiB VMEM safe with double buffering).
    s_align = 8 if dtype_bytes >= 4 else (16 if dtype_bytes == 2 else 32)
    if ts is None:
        target_block_bytes = 4 * 1024 * 1024
        max_ts = max(s_align, target_block_bytes // max(1, tb * th * dtype_bytes))
        ts = _pick_tile(S, s_align, max_ts)

    grid = (B // tb, H // th, S // ts)

    # Explicit VMEM budget (double-buffered in/out blocks + f32 accumulator).
    need = (2 * tb * ts * th * dtype_bytes
            + 2 * tb * ts * mask_bytes
            + 2 * tb * th * dtype_bytes
            + tb * th * 4)
    vmem_limit = int(min(48 * 1024 * 1024, max(16 * 1024 * 1024, 2 * need)))

    cost = pl.CostEstimate(
        flops=2 * B * S * H,
        transcendentals=0,
        bytes_accessed=(B * S * H * dtype_bytes
                        + B * S * mask_bytes
                        + B * H * dtype_bytes),
    )

    kernel = functools.partial(_mean_pool_kernel, inv_s=1.0 / S)

    return pl.pallas_call(
        kernel,
        out_shape=jax.ShapeDtypeStruct((B, H), dtype),
        grid_spec=pltpu.PrefetchScalarGridSpec(
            num_scalar_prefetch=0,
            grid=grid,
            in_specs=[
                pl.BlockSpec((tb, ts, th), lambda b, h, s: (b, s, h)),
                pl.BlockSpec((tb, ts, 1), lambda b, h, s: (b, s, 0)),
            ],
            out_specs=pl.BlockSpec((tb, th), lambda b, h, s: (b, h)),
            scratch_shapes=[pltpu.VMEM((tb, th), jnp.float32)],
        ),
        compiler_params=pltpu.CompilerParams(
            dimension_semantics=("parallel", "parallel", "arbitrary"),
            vmem_limit_bytes=vmem_limit,
        ),
        cost_estimate=cost,
    )(last_hidden_state, mask3d)


def _reference(last_hidden_state, attention_mask):
    mask = jnp.squeeze(attention_mask, axis=1)[:, :, None]
    return jnp.mean(last_hidden_state * mask, axis=1)


if __name__ == "__main__":
    key = jax.random.PRNGKey(0)
    k1, k2, k3, k4 = jax.random.split(key, 4)

    # ---- small shape (single grid step) ---------------------------------
    B, S, H = 2, 8, 32
    hs = jax.random.normal(k1, (B, S, H), dtype=jnp.float32)
    mask = (jax.random.uniform(k2, (B, 1, S)) > 0.3).astype(jnp.float32)

    out = jax.block_until_ready(mean_pooling(hs, mask))
    ref = _reference(hs, mask)
    assert out.shape == (B, H)
    assert jnp.allclose(out, ref, atol=1e-5, rtol=1e-5), "mismatch (small)"

    # ---- larger shape exercising the tiled S-reduction and H tiling ------
    B2, S2, H2 = 8, 64, 256
    hs2 = jax.random.normal(k3, (B2, S2, H2), dtype=jnp.float32)
    mask2 = (jax.random.uniform(k4, (B2, 1, S2)) > 0.3).astype(jnp.float32)

    out2 = jax.block_until_ready(mean_pooling(hs2, mask2, tb=8, ts=16, th=128))
    ref2 = _reference(hs2, mask2)
    assert out2.shape == (B2, H2)
    assert jnp.allclose(out2, ref2, atol=1e-5, rtol=1e-5), "mismatch (tiled)"

    print("KERNEL_OK")
</pallas_src>

<mosaic_0001>
module attributes {stable_mosaic.version = 11 : i64} {
  func.func @_mean_pool_kernel(%arg0: i32, %arg1: i32, %arg2: i32, %arg3: memref<2x8x32xf32, #tpu.memory_space<vmem>>, %arg4: memref<2x8x1xf32, #tpu.memory_space<vmem>>, %arg5: memref<2x32xf32, #tpu.memory_space<vmem>>, %arg6: memref<2x32xf32, #tpu.memory_space<vmem>>) attributes {dimension_semantics = [#tpu.dimension_semantics<parallel>, #tpu.dimension_semantics<parallel>, #tpu.dimension_semantics<arbitrary>], iteration_bounds = array<i64: 1, 1, 1>, scalar_prefetch = 0 : i64, scratch_operands = 1 : i64, tpu.core_type = #tpu.core_type<tc>, window_params = [{transform_indices = @transform_0, window_bounds = array<i64: 2, 8, 32>}, {transform_indices = @transform_1, window_bounds = array<i64: 2, 8, 1>}, {transform_indices = @transform_2, window_bounds = array<i64: 2, 32>}]} {
    %c0_i32 = arith.constant 0 : i32
    %0 = arith.cmpi eq, %arg2, %c0_i32 : i32
    %1 = arith.extui %0 : i1 to i32
    %c0_i32_0 = arith.constant 0 : i32
    %2 = arith.cmpi ne, %1, %c0_i32_0 : i32
    scf.if %2 {
      %cst_12 = arith.constant 0.000000e+00 : f32
      %14 = vector.broadcast %cst_12 : f32 to vector<2x32xf32>
      %c0_13 = arith.constant 0 : index
      %c0_14 = arith.constant 0 : index
      %15 = vector.load %arg6[%c0_13, %c0_14] : memref<2x32xf32, #tpu.memory_space<vmem>>, vector<2x32xf32>
      tpu.vector_store %arg6[%c0_13, %c0_14], %14 {strides = array<i32>} : memref<2x32xf32, #tpu.memory_space<vmem>>, vector<2x32xf32>,
    } else {
    }
    %c0 = arith.constant 0 : index
    %c0_1 = arith.constant 0 : index
    %c0_2 = arith.constant 0 : index
    %3 = vector.load %arg3[%c0, %c0_1, %c0_2] : memref<2x8x32xf32, #tpu.memory_space<vmem>>, vector<2x8x32xf32>
    %c0_3 = arith.constant 0 : index
    %c0_4 = arith.constant 0 : index
    %c0_5 = arith.constant 0 : index
    %4 = vector.load %arg4[%c0_3, %c0_4, %c0_5] : memref<2x8x1xf32, #tpu.memory_space<vmem>>, vector<2x8x1xf32>
    %c0_6 = arith.constant 0 : index
    %c0_7 = arith.constant 0 : index
    %5 = vector.load %arg6[%c0_6, %c0_7] : memref<2x32xf32, #tpu.memory_space<vmem>>, vector<2x32xf32>
    %6 = vector.broadcast %4 : vector<2x8x1xf32> to vector<2x8x32xf32>
    %7 = arith.mulf %3, %6 : vector<2x8x32xf32>
    %cst = arith.constant dense<0.000000e+00> : vector<2x32xf32>
    %8 = vector.multi_reduction <add>, %7, %cst [1] : vector<2x8x32xf32> to vector<2x32xf32>
    %9 = arith.addf %5, %8 : vector<2x32xf32>
    %c0_8 = arith.constant 0 : index
    %c0_9 = arith.constant 0 : index
    %10 = vector.load %arg6[%c0_8, %c0_9] : memref<2x32xf32, #tpu.memory_space<vmem>>, vector<2x32xf32>
    tpu.vector_store %arg6[%c0_8, %c0_9], %9 {strides = array<i32>} : memref<2x32xf32, #tpu.memory_space<vmem>>, vector<2x32xf32>,
    %c0_i32_10 = arith.constant 0 : i32
    %11 = arith.cmpi eq, %arg2, %c0_i32_10 : i32
    %12 = arith.extui %11 : i1 to i32
    %c0_i32_11 = arith.constant 0 : i32
    %13 = arith.cmpi ne, %12, %c0_i32_11 : i32
    scf.if %13 {
      %c0_12 = arith.constant 0 : index
      %c0_13 = arith.constant 0 : index
      %14 = vector.load %arg6[%c0_12, %c0_13] : memref<2x32xf32, #tpu.memory_space<vmem>>, vector<2x32xf32>
      %cst_14 = arith.constant 1.250000e-01 : f32
      %15 = vector.broadcast %cst_14 : f32 to vector<2x32xf32>
      %16 = arith.mulf %14, %15 : vector<2x32xf32>
      %c0_15 = arith.constant 0 : index
      %c0_16 = arith.constant 0 : index
      %17 = vector.load %arg5[%c0_15, %c0_16] : memref<2x32xf32, #tpu.memory_space<vmem>>, vector<2x32xf32>
      tpu.vector_store %arg5[%c0_15, %c0_16], %16 {strides = array<i32>} : memref<2x32xf32, #tpu.memory_space<vmem>>, vector<2x32xf32>,
    } else {
    }
    return
  }
  func.func @transform_0(%arg0: i32, %arg1: i32, %arg2: i32) -> (i32, i32, i32) {
    %c0_i32 = arith.constant 0 : i32
    return %arg0, %arg2, %arg1 : i32, i32, i32
  }
  func.func @transform_1(%arg0: i32, %arg1: i32, %arg2: i32) -> (i32, i32, i32) {
    %c0_i32 = arith.constant 0 : i32
    %c0_i32_0 = arith.constant 0 : i32
    return %arg0, %arg2, %c0_i32 : i32, i32, i32
  }
  func.func @transform_2(%arg0: i32, %arg1: i32, %arg2: i32) -> (i32, i32) {
    %c0_i32 = arith.constant 0 : i32
    return %arg0, %arg1 : i32, i32
  }
}

</mosaic_0001>

<bundles_post_ra>
// kernel: tpu_custom_call.1
= control target key start
LH: loop header
LB: loop body
LE: loop exit
PB: predicated region body
PF: predicated region fallthrough
CT: control target
= control target key end

     0   :  { %s146_s0 = inlined_call_operand.vmem [shape: f32[2,8,32], index: 0, kind: input, shape index: {}]   ;;  %s147_s1 = inlined_call_operand.vmem [shape: f32[2,8,1], index: 1, kind: input, shape index: {}]   ;;  %s148_s2 = inlined_call_operand.hbm [shape: f32[2,32], index: 2, kind: output, shape index: {}]  }
   0x1   :  { %v20_v0 = vld [vmem:[%s147_s1] sm:$0xff] }
   0x2   :  { %7 = vsyncpa [#allocation4], 0  ;;  %v110_v1 = vmov 0   ;;  %v21_v2 = vld [vmem:[%s147_s1 + $0x8] sm:$0xff]  ;;  %vm16_vm0 = vcmask 254976   ;;  %v111_v3 = vmov 0.0  }
   0x3   :  { %83 = vset.pattern.permute.xlu0 %v110_v1  ;;  %17 = vst.msk [vmem:[#allocation2] sm:$0x3] %vm16_vm0, %v111_v3  ;;  %v18_v4 = vld [vmem:[%s146_s0] sm:$0xff]  ;;  %vm35_vm1 = vcmask 261120   ;;  %v19_v10 = vld [vmem:[%s146_s0 + $0x8] sm:$0xff]  ;;  %vm52_vm2 = vcmask 1041409  }
   0x4   :  { %25 = vperm.xlu0 %83, %v20_v0   ;;  %s112_s0 = smov [#allocation3]   ;;  %s71_s19 = sshll.u32 %s148_s2, 4  ;;  %s72_s19 = int_to_ptr.hbm [resolvable:$true] %s71_s19 }
   0x5   :  { %s69_s1 = sshll.u32 %s112_s0, 4  ;;  %s70_s1 = int_to_ptr.vmem [resolvable:$true] %s69_s1 }
   0xa   :  { %v22_v24 = vld [vmem:[#allocation2] sm:$0x3] }
   0xc   :  { %30 = vperm.xlu0 %83, %v21_v2  }
  0x76   :  { %v26_v5 = vpop.permute.xlu0 %25 }
  0x77   :  { %v33_v6 = vmul.f32 %v26_v5, %v18_v4 }
  0x79   :  { %v36_v7 = vsel %vm35_vm1, %v33_v6, 0.0 }
  0x7a   :  { %v37_v8 = vrot.slane %v36_v7, 4 }
  0x7c   :  { %v38_v9 = vadd.f32 %v37_v8, %v36_v7 }
  0x7e   :  { %v31_v11 = vpop.permute.xlu0 %30  ;;  %v39_v13 = vrot.slane %v38_v9, 2 }
  0x7f   :  { %v34_v12 = vmul.f32 %v31_v11, %v19_v10 }
  0x80   :  { %v40_v16 = vadd.f32 %v39_v13, %v38_v9 }
  0x81   :  { %v43_v14 = vsel %vm35_vm1, %v34_v12, 0.0 }
  0x82   :  { %v44_v15 = vrot.slane %v43_v14, 4  ;;  %v41_v19 = vrot.slane %v40_v16, 1 }
  0x84   :  { %v45_v17 = vadd.f32 %v44_v15, %v43_v14  ;;  %v42_v22 = vadd.f32 %v41_v19, %v40_v16 }
  0x86   :  { %v46_v18 = vrot.slane %v45_v17, 2 }
  0x88   :  { %v47_v20 = vadd.f32 %v46_v18, %v45_v17 }
  0x8a   :  { %v48_v21 = vrot.slane %v47_v20, 1 }
  0x8c   :  { %v49_v23 = vadd.f32 %v48_v21, %v47_v20 }
  0x8e   :  { %v53_v25 = vsel %vm52_vm2, %v49_v23, %v42_v22 }
  0x8f   :  { %v55_v26 = vadd.f32 %v53_v25, %v22_v24 }
  0x91   :  { %57 = vst.msk [vmem:[#allocation2] sm:$0x3] %vm16_vm0, %v55_v26 }
  0x98   :  { %v61_v27 = vld [vmem:[#allocation2] sm:$0x3] }
  0x99   :  { %v62_v28 = vmul.f32 0.125, %v61_v27 }
  0x9b   :  { %63 = vst.msk [vmem:[#allocation3] sm:$0x3] %vm16_vm0, %v62_v28 }
  0x9c   :  { %74 = dma.vmem_to_hbm [thread:$0]  %s70_s1, 32, %s72_s19, [#allocation4]  }
  0x9d   :  { %108 = dma.done.wait [#allocation4], 32  }
  0x9e   :  { %109 = vsyncadd [#allocation4], 4294967264 }
  0x9f   :  { %79 = vsyncpa [#allocation4], 1 }

</bundles_post_ra>
